<compile_context>
chip_gen: v5e
topology: v5e:2x2
jax: 0.10.0
libtpu: 0.0.40
codegen_flags: <defaults>
</compile_context>

<pallas_src>
import math

import jax
import jax.numpy as jnp
from jax.experimental import pallas as pl
from jax.experimental.pallas import tpu as pltpu

_INV_SQRT2 = 1.0 / math.sqrt(2.0)


# ------------------------------- kernel body -------------------------------
def _ffn_kernel(x_ref, w1_ref, b1_ref, w2_ref, b2_ref, o_ref, acc_ref):
    """One (TM, D) token tile x one TF-wide hidden-dim chunk.

    grid = (M_blocks, F_blocks); the F axis is a reduction ("arbitrary"):
    fc1 partial -> bias -> exact GELU -> fc2 partial accumulated into acc_ref.
    """
    kf = pl.program_id(1)

    @pl.when(kf == 0)
    def _():
        acc_ref[...] = jnp.zeros_like(acc_ref)

    # In-kernel bf16 cast of the activations (hidden under MXU work).
    x = x_ref[...].astype(jnp.bfloat16)                                # (TM, D)
    h = jnp.dot(x, w1_ref[...], preferred_element_type=jnp.float32)    # (TM, TF)
    h = h + b1_ref[...]                                                 # f32 bias
    # Exact (erf) GELU -- matches torch.nn.GELU() default.
    h = 0.5 * h * (1.0 + jax.lax.erf(h * _INV_SQRT2))
    # dropout -> identity (eval mode)
    h = h.astype(jnp.bfloat16)
    acc_ref[...] += jnp.dot(h, w2_ref[...], preferred_element_type=jnp.float32)

    @pl.when(kf == pl.num_programs(1) - 1)
    def _():
        o_ref[...] = (acc_ref[...] + b2_ref[...]).astype(o_ref.dtype)


# ----------------------------- tiling helpers ------------------------------
def _vmem_capacity_bytes():
    # Generation-aware per-core VMEM (v5e/v6e: 128 MiB, v7x: 64 MiB).
    try:
        return int(pltpu.get_tpu_info().vmem_capacity_bytes)
    except Exception:  # capability query only; fall back conservatively (v7x)
        return 64 * 1024 * 1024


def _tile_need_bytes(tm, tf, D, x_bytes, out_bytes):
    return (2 * tm * D * x_bytes        # double-buffered x tiles
            + 2 * D * tf * 2            # double-buffered w1 tiles (bf16)
            + 2 * tf * D * 2            # double-buffered w2 tiles (bf16)
            + 2 * tf * 4 + 2 * D * 4    # bias tiles (f32)
            + 2 * tm * D * out_bytes    # double-buffered output tiles
            + tm * D * 4                # f32 accumulator scratch
            + 2 * tm * tf * 4)          # fc1 f32 intermediate + headroom


def _choose_tiles(M, D, F, budget, x_bytes, out_bytes):
    """Pick MXU/sublane-aligned (TM, TF) that fit the VMEM budget."""
    m_ceil = max(8, ((M + 7) // 8) * 8)
    tm_cands = [t for t in (512, 256, 128, 64, 32, 16, 8) if t <= m_ceil]
    if not tm_cands:
        tm_cands = [m_ceil]
    # TF must divide F and be lane-aligned (multiple of 128) unless TF == F.
    tf_cands = sorted(
        {F} | {t for t in (4096, 2048, 1024, 512, 256, 128) if F % t == 0},
        reverse=True)
    for tm in tm_cands:            # prefer large TM (amortize per-step overhead,
        for tf in tf_cands:        # weight re-stream traffic scales with M/TM)
            if _tile_need_bytes(tm, tf, D, x_bytes, out_bytes) <= budget:
                return tm, tf
    return tm_cands[-1], tf_cands[-1]


# --------------------------------- wrapper ----------------------------------
def prepare_ffn_params(params):
    """One-time parameter prep: (in, out)-layout weights -> bf16, biases -> f32
    lane-dense row vectors.  Do this once, not per call."""
    D, F = params["w1"].shape
    return {
        "w1": params["w1"].astype(jnp.bfloat16),
        "b1": params["b1"].reshape(1, F).astype(jnp.float32),
        "w2": params["w2"].astype(jnp.bfloat16),
        "b2": params["b2"].reshape(1, D).astype(jnp.float32),
    }


def feed_forward(x, params, *, out_dtype=jnp.float32):
    """x: (..., D).  params: w1 (D,F), b1, w2 (F,D), b2 (prefer prepare_ffn_params).

    Weights are stored pre-transposed to (in, out) so the kernel does x @ W + b
    (torch nn.Linear stores (out, in))."""
    orig_shape = x.shape
    D = orig_shape[-1]
    M = math.prod(orig_shape[:-1])
    w1, b1, w2, b2 = params["w1"], params["b1"], params["w2"], params["b2"]
    F = w1.shape[1]

    # Accept un-prepped params, but prepare_ffn_params() avoids per-call casts.
    if w1.dtype != jnp.bfloat16:
        w1 = w1.astype(jnp.bfloat16)
    if w2.dtype != jnp.bfloat16:
        w2 = w2.astype(jnp.bfloat16)
    b1 = b1.reshape(1, F).astype(jnp.float32)
    b2 = b2.reshape(1, D).astype(jnp.float32)

    x_bytes = jnp.dtype(x.dtype).itemsize
    out_bytes = jnp.dtype(out_dtype).itemsize
    budget = int(_vmem_capacity_bytes() * 0.85)
    tm, tf = _choose_tiles(M, D, F, budget, x_bytes, out_bytes)

    m_blocks = pl.cdiv(M, tm)
    M_pad = m_blocks * tm
    f_blocks = F // tf

    x2 = x.reshape(M, D)
    if M_pad != M:
        # Pad tokens to a TM multiple; padded rows are discarded after the call.
        x2 = jnp.pad(x2, ((0, M_pad - M), (0, 0)))

    need = _tile_need_bytes(tm, tf, D, x_bytes, out_bytes)
    vmem_limit = max(min(max(2 * need, 32 << 20), budget), need)

    # TODO(synk): for d_model < 128 a lane-dense (M*D//128, 128) output view
    # would avoid masked partial stores; real models (D >= 128) don't need it.
    grid_spec = pltpu.PrefetchScalarGridSpec(
        num_scalar_prefetch=0,
        grid=(m_blocks, f_blocks),
        in_specs=[
            pl.BlockSpec((tm, D), lambda i, k: (i, 0)),   # x tile (reused over k)
            pl.BlockSpec((D, tf), lambda i, k: (0, k)),   # w1 tile (streamed)
            pl.BlockSpec((1, tf), lambda i, k: (0, k)),   # b1 tile
            pl.BlockSpec((tf, D), lambda i, k: (k, 0)),   # w2 tile (streamed)
            pl.BlockSpec((1, D), lambda i, k: (0, 0)),    # b2 (resident)
        ],
        out_specs=pl.BlockSpec((tm, D), lambda i, k: (i, 0)),
        scratch_shapes=[pltpu.VMEM((tm, D), jnp.float32)],
    )

    out = pl.pallas_call(
        _ffn_kernel,
        out_shape=jax.ShapeDtypeStruct((M_pad, D), out_dtype),
        grid_spec=grid_spec,
        compiler_params=pltpu.CompilerParams(
            dimension_semantics=("parallel", "arbitrary"),
            vmem_limit_bytes=int(vmem_limit),
        ),
    )(x2, w1, b1, w2, b2)

    if M_pad != M:
        out = out[:M]
    return out.reshape(orig_shape)


# ------------------------- pure-JAX f32 reference -------------------------
def feed_forward_ref(x, params):
    h = x @ params["w1"] + params["b1"]
    h = 0.5 * h * (1.0 + jax.lax.erf(h * _INV_SQRT2))   # exact GELU
    # dropout -> identity (eval)
    return h @ params["w2"] + params["b2"]


if __name__ == "__main__":
    # Small shapes consistent with the module: batch=2, seq=8, d_model=32,
    # dim_feedforward=64.
    B, S, D, F = 2, 8, 32, 64

    key = jax.random.PRNGKey(0)
    k1, k2, k3, k4, kx = jax.random.split(key, 5)

    raw_params = {
        # nn.Linear weights are (out, in); stored transposed as (in, out).
        "w1": (0.05 * jax.random.normal(k1, (D, F))).astype(jnp.float32),
        "b1": (0.05 * jax.random.normal(k2, (F,))).astype(jnp.float32),
        "w2": (0.05 * jax.random.normal(k3, (F, D))).astype(jnp.float32),
        "b2": (0.05 * jax.random.normal(k4, (D,))).astype(jnp.float32),
    }
    params = prepare_ffn_params(raw_params)   # one-time bf16 weight cast
    x = jax.random.normal(kx, (B, S, D), dtype=jnp.float32)

    out = jax.block_until_ready(feed_forward(x, params))
    ref = feed_forward_ref(x, raw_params)

    assert out.shape == (B, S, D)
    # bf16 matmuls with f32 accumulation -> loosened tolerance vs f32 reference.
    max_err = float(jnp.max(jnp.abs(out - ref)))
    assert jnp.allclose(out, ref, atol=1e-2, rtol=1e-2), (
        "mismatch vs reference, max abs err = %e" % max_err)

    print("KERNEL_OK")
</pallas_src>

<mosaic_0001>
module attributes {stable_mosaic.version = 11 : i64} {
  func.func @_ffn_kernel(%arg0: i32, %arg1: i32, %arg2: memref<16x32xf32, #tpu.memory_space<vmem>>, %arg3: memref<32x64xbf16, #tpu.memory_space<vmem>>, %arg4: memref<1x64xf32, #tpu.memory_space<vmem>>, %arg5: memref<64x32xbf16, #tpu.memory_space<vmem>>, %arg6: memref<1x32xf32, #tpu.memory_space<vmem>>, %arg7: memref<16x32xf32, #tpu.memory_space<vmem>>, %arg8: memref<16x32xf32, #tpu.memory_space<vmem>>) attributes {dimension_semantics = [#tpu.dimension_semantics<parallel>, #tpu.dimension_semantics<arbitrary>], iteration_bounds = array<i64: 1, 1>, scalar_prefetch = 0 : i64, scratch_operands = 1 : i64, tpu.core_type = #tpu.core_type<tc>, window_params = [{transform_indices = @transform_0, window_bounds = array<i64: 16, 32>}, {transform_indices = @transform_1, window_bounds = array<i64: 32, 64>}, {transform_indices = @transform_2, window_bounds = array<i64: 1, 64>}, {transform_indices = @transform_3, window_bounds = array<i64: 64, 32>}, {pipeline_mode = #tpu.pipeline_mode<synchronous>, transform_indices = @transform_4, window_bounds = array<i64: 1, 32>}, {transform_indices = @transform_5, window_bounds = array<i64: 16, 32>}]} {
    %c0_i32 = arith.constant 0 : i32
    %0 = arith.cmpi eq, %arg1, %c0_i32 : i32
    %1 = arith.extui %0 : i1 to i32
    %c0_i32_0 = arith.constant 0 : i32
    %2 = arith.cmpi ne, %1, %c0_i32_0 : i32
    scf.if %2 {
      %cst_18 = arith.constant 0.000000e+00 : f32
      %27 = vector.broadcast %cst_18 : f32 to vector<16x32xf32>
      %c0_19 = arith.constant 0 : index
      %c0_20 = arith.constant 0 : index
      %28 = vector.load %arg8[%c0_19, %c0_20] : memref<16x32xf32, #tpu.memory_space<vmem>>, vector<16x32xf32>
      tpu.vector_store %arg8[%c0_19, %c0_20], %27 {strides = array<i32>} : memref<16x32xf32, #tpu.memory_space<vmem>>, vector<16x32xf32>,
    } else {
    }
    %c0 = arith.constant 0 : index
    %c0_1 = arith.constant 0 : index
    %3 = vector.load %arg2[%c0, %c0_1] : memref<16x32xf32, #tpu.memory_space<vmem>>, vector<16x32xf32>
    %4 = arith.truncf %3 : vector<16x32xf32> to vector<16x32xbf16>
    %c0_2 = arith.constant 0 : index
    %c0_3 = arith.constant 0 : index
    %5 = vector.load %arg3[%c0_2, %c0_3] : memref<32x64xbf16, #tpu.memory_space<vmem>>, vector<32x64xbf16>
    %cst = arith.constant dense<0.000000e+00> : vector<16x64xf32>
    %6 = tpu.matmul %4, %5, %cst {dimension_numbers = #tpu.dot_dimension_numbers<[1], [0], [0], [1], [0, 0, 1, 1], [], []>} : vector<16x32xbf16>, vector<32x64xbf16>, vector<16x64xf32> -> vector<16x64xf32>
    %c0_4 = arith.constant 0 : index
    %c0_5 = arith.constant 0 : index
    %7 = vector.load %arg4[%c0_4, %c0_5] : memref<1x64xf32, #tpu.memory_space<vmem>>, vector<1x64xf32>
    %8 = vector.broadcast %7 : vector<1x64xf32> to vector<16x64xf32>
    %9 = arith.addf %6, %8 : vector<16x64xf32>
    %cst_6 = arith.constant 5.000000e-01 : f32
    %10 = vector.broadcast %cst_6 : f32 to vector<16x64xf32>
    %11 = arith.mulf %10, %9 : vector<16x64xf32>
    %cst_7 = arith.constant 0.707106769 : f32
    %12 = vector.broadcast %cst_7 : f32 to vector<16x64xf32>
    %13 = arith.mulf %9, %12 : vector<16x64xf32>
    %14 = math.erf %13 : vector<16x64xf32>
    %cst_8 = arith.constant 1.000000e+00 : f32
    %15 = vector.broadcast %cst_8 : f32 to vector<16x64xf32>
    %16 = arith.addf %15, %14 : vector<16x64xf32>
    %17 = arith.mulf %11, %16 : vector<16x64xf32>
    %18 = arith.truncf %17 : vector<16x64xf32> to vector<16x64xbf16>
    %c0_9 = arith.constant 0 : index
    %c0_10 = arith.constant 0 : index
    %19 = vector.load %arg8[%c0_9, %c0_10] : memref<16x32xf32, #tpu.memory_space<vmem>>, vector<16x32xf32>
    %c0_11 = arith.constant 0 : index
    %c0_12 = arith.constant 0 : index
    %20 = vector.load %arg5[%c0_11, %c0_12] : memref<64x32xbf16, #tpu.memory_space<vmem>>, vector<64x32xbf16>
    %cst_13 = arith.constant dense<0.000000e+00> : vector<16x32xf32>
    %21 = tpu.matmul %18, %20, %cst_13 {dimension_numbers = #tpu.dot_dimension_numbers<[1], [0], [0], [1], [0, 0, 1, 1], [], []>} : vector<16x64xbf16>, vector<64x32xbf16>, vector<16x32xf32> -> vector<16x32xf32>
    %22 = arith.addf %19, %21 : vector<16x32xf32>
    %c0_14 = arith.constant 0 : index
    %c0_15 = arith.constant 0 : index
    %23 = vector.load %arg8[%c0_14, %c0_15] : memref<16x32xf32, #tpu.memory_space<vmem>>, vector<16x32xf32>
    tpu.vector_store %arg8[%c0_14, %c0_15], %22 {strides = array<i32>} : memref<16x32xf32, #tpu.memory_space<vmem>>, vector<16x32xf32>,
    %c0_i32_16 = arith.constant 0 : i32
    %24 = arith.cmpi eq, %arg1, %c0_i32_16 : i32
    %25 = arith.extui %24 : i1 to i32
    %c0_i32_17 = arith.constant 0 : i32
    %26 = arith.cmpi ne, %25, %c0_i32_17 : i32
    scf.if %26 {
      %c0_18 = arith.constant 0 : index
      %c0_19 = arith.constant 0 : index
      %27 = vector.load %arg8[%c0_18, %c0_19] : memref<16x32xf32, #tpu.memory_space<vmem>>, vector<16x32xf32>
      %c0_20 = arith.constant 0 : index
      %c0_21 = arith.constant 0 : index
      %28 = vector.load %arg6[%c0_20, %c0_21] : memref<1x32xf32, #tpu.memory_space<vmem>>, vector<1x32xf32>
      %29 = vector.broadcast %28 : vector<1x32xf32> to vector<16x32xf32>
      %30 = arith.addf %27, %29 : vector<16x32xf32>
      %c0_22 = arith.constant 0 : index
      %c0_23 = arith.constant 0 : index
      %31 = vector.load %arg7[%c0_22, %c0_23] : memref<16x32xf32, #tpu.memory_space<vmem>>, vector<16x32xf32>
      tpu.vector_store %arg7[%c0_22, %c0_23], %30 {strides = array<i32>} : memref<16x32xf32, #tpu.memory_space<vmem>>, vector<16x32xf32>,
    } else {
    }
    return
  }
  func.func @transform_0(%arg0: i32, %arg1: i32) -> (i32, i32) {
    %c0_i32 = arith.constant 0 : i32
    %c0_i32_0 = arith.constant 0 : i32
    return %arg0, %c0_i32 : i32, i32
  }
  func.func @transform_1(%arg0: i32, %arg1: i32) -> (i32, i32) {
    %c0_i32 = arith.constant 0 : i32
    %c0_i32_0 = arith.constant 0 : i32
    return %c0_i32, %arg1 : i32, i32
  }
  func.func @transform_2(%arg0: i32, %arg1: i32) -> (i32, i32) {
    %c0_i32 = arith.constant 0 : i32
    %c0_i32_0 = arith.constant 0 : i32
    return %c0_i32, %arg1 : i32, i32
  }
  func.func @transform_3(%arg0: i32, %arg1: i32) -> (i32, i32) {
    %c0_i32 = arith.constant 0 : i32
    %c0_i32_0 = arith.constant 0 : i32
    return %arg1, %c0_i32 : i32, i32
  }
  func.func @transform_4(%arg0: i32, %arg1: i32) -> (i32, i32) {
    %c0_i32 = arith.constant 0 : i32
    %c0_i32_0 = arith.constant 0 : i32
    %c0_i32_1 = arith.constant 0 : i32
    return %c0_i32, %c0_i32_0 : i32, i32
  }
  func.func @transform_5(%arg0: i32, %arg1: i32) -> (i32, i32) {
    %c0_i32 = arith.constant 0 : i32
    %c0_i32_0 = arith.constant 0 : i32
    return %arg0, %c0_i32 : i32, i32
  }
}

</mosaic_0001>

<bundles_post_ra>
// kernel: tpu_custom_call.1
= control target key start
LH: loop header
LB: loop body
LE: loop exit
PB: predicated region body
PF: predicated region fallthrough
CT: control target
= control target key end

     0   :  { %s408_s0 = inlined_call_operand.vmem [shape: f32[16,32], index: 0, kind: input, shape index: {}]   ;;  %s409_s1 = inlined_call_operand.vmem [shape: bf16[32,64], index: 1, kind: input, shape index: {}]   ;;  %s410_s2 = inlined_call_operand.vmem [shape: f32[1,64], index: 2, kind: input, shape index: {}]   ;;  %s411_s3 = inlined_call_operand.vmem [shape: bf16[64,32], index: 3, kind: input, shape index: {}]   ;;  %s412_s4 = inlined_call_operand.vmem [shape: f32[1,32], index: 4, kind: input, shape index: {}]   ;;  %s413_s5 = inlined_call_operand.hbm [shape: f32[16,32], index: 5, kind: output, shape index: {}]  }
   0x1   :  { %v275_v0 = vld [vmem:[%s409_s1 + $0x8] sm:$0xff]  ;;  %v274_v1 = vld [vmem:[%s409_s1] sm:$0xff] }
   0x2   :  { %v29_v2 = vld [vmem:[%s408_s0] sm:$0xff]  ;;  %62 = vmatpush.bf16.msra.mxu0 %v275_v0  ;;  %v30_v3 = vld [vmem:[%s408_s0 + $0x8] sm:$0xff] }
   0x3   :  { %10 = vsyncpa [#allocation4], 0  ;;  %v31_v4 = vpack.c.bf16 %v30_v3, %v29_v2  ;;  %vm26_vm0 = vcmask 261120   ;;  %v284_v5 = vld [vmem:[%s410_s2] ss:$0 sm:$0xff]  ;;  %v279_v24 = vld [vmem:[%s411_s3 + $0x18] sm:$0xff] }
   0x4   :  { %201 = vmatpush.bf16.msra.mxu1 %v279_v24  ;;  %v278_v32 = vld [vmem:[%s411_s3 + $0x10] sm:$0xff]  ;;  %v277_v40 = vld [vmem:[%s411_s3 + $0x8] sm:$0xff]  ;;  %v276_v46 = vld [vmem:[%s411_s3] sm:$0xff]  ;;  %v316_v52 = vmov 0.0   ;;  %vm193_vm9 = vcmask 523264   ;;  %s317_s9 = smov [#allocation3]  }
   0x5   :  { %27 = vst.msk [vmem:[#allocation2] sm:$0xff] %vm26_vm0, %v316_v52  ;;  %s232_s10 = sshll.u32 %s317_s9, 4  ;;  %s234_s13 = sshll.u32 %s413_s5, 4  ;;  %s233_s10 = int_to_ptr.vmem [resolvable:$true] %s232_s10  ;;  %s235_s13 = int_to_ptr.hbm [resolvable:$true] %s234_s13 }
   0x6   :  { %63 = vmatpush.bf16.msra.mxu0 %v274_v1  ;;  %28 = vst.msk [vmem:[#allocation2 + $0x8] sm:$0xff] %vm26_vm0, %v316_v52  ;;  %s319_s14 = smov 8  }
   0x8   :  { %202 = vmatpush.bf16.msra.mxu1 %v278_v32 }
   0x9   :  { %254 = vmatmul.msk.bf16.vlgmr.msra.gmra.mxu0 %vm26_vm0, %v31_v4 }
   0xc   :  { %203 = vmatpush.bf16.msra.mxu1 %v277_v40 }
  0x10   :  { %204 = vmatpush.bf16.msra.mxu1 %v276_v46 }
  0x86   :  { %v65_v6 = vpop.f32.mrf.mxu0 }
  0x87   :  { %v366_v7 = vadd.f32 %v284_v5, %v65_v6 }
  0x89   :  { %v369_v8 = vmul.f32 0.70710677, %v366_v7 }
  0x8b   :  { %v74_v9 = vmul.f32 %v369_v8, %v369_v8 }
  0x8d   :  { %v75_v10 = vmin.f32 %v74_v9, 16.0 }
  0x8e   :  { %v67_v11 = vpop.f32.mrf.mxu0 }
  0x8f   :  { %v76_v12 = vmul.f32 2.1237322e-06, %v75_v10  ;;  %v87_v13 = vmul.f32 3.8918573e-05, %v75_v10  ;;  %v373_v14 = vadd.f32 %v284_v5, %v67_v11 }
  0x91   :  { %v77_v15 = vadd.f32 0.00028619796, %v76_v12  ;;  %v88_v16 = vadd.f32 0.001143296, %v87_v13  ;;  %v376_v17 = vmul.f32 0.70710677, %v373_v14 }
  0x93   :  { %v89_v18 = vmul.f32 %v88_v16, %v75_v10  ;;  %v114_v19 = vmul.f32 %v376_v17, %v376_v17  ;;  %v78_v20 = vmul.f32 %v77_v15, %v75_v10 }
  0x95   :  { %v90_v21 = vadd.f32 0.014752088, %v89_v18  ;;  %v115_v22 = vmin.f32 %v114_v19, 16.0  ;;  %v79_v27 = vadd.f32 0.0036580483, %v78_v20 }
  0x97   :  { %v91_v23 = vmul.f32 %v90_v21, %v75_v10  ;;  %v116_v25 = vmul.f32 2.1237322e-06, %v115_v22  ;;  %v127_v26 = vmul.f32 3.8918573e-05, %v115_v22  ;;  %v80_v35 = vmul.f32 %v79_v27, %v75_v10 }
  0x98   :  { %v70_v27 = vmul.f32 0.5, %v366_v7 }
  0x99   :  { %v92_v28 = vadd.f32 0.112945676, %v91_v23  ;;  %v117_v29 = vadd.f32 0.00028619796, %v116_v25  ;;  %v128_v30 = vadd.f32 0.001143296, %v127_v26 }
  0x9a   :  { %v81_v42 = vadd.f32 0.05243302, %v80_v35 }
  0x9b   :  { %v93_v31 = vmul.f32 %v92_v28, %v75_v10  ;;  %v118_v33 = vmul.f32 %v117_v29, %v115_v22  ;;  %v129_v34 = vmul.f32 %v128_v30, %v115_v22  ;;  %v71_v28 = vmul.f32 0.5, %v373_v14 }
  0x9c   :  { %v82_v48 = vmul.f32 %v81_v42, %v75_v10 }
  0x9d   :  { %v94_v36 = vadd.f32 0.4994258, %v93_v31  ;;  %v119_v37 = vadd.f32 0.0036580483, %v118_v33  ;;  %v130_v38 = vadd.f32 0.014752088, %v129_v34 }
  0x9e   :  { %v83_v54 = vadd.f32 0.18741608, %v82_v48  ;;  %v159_v33 = vld [vmem:[#allocation2] sm:$0xff] }
  0x9f   :  { %v95_v39 = vmul.f32 %v94_v36, %v75_v10  ;;  %v131_v41 = vmul.f32 %v130_v38, %v115_v22  ;;  %v120_v44 = vmul.f32 %v119_v37, %v115_v22  ;;  %v285_v36 = vld [vmem:[%s412_s4] ss:$0 sm:$0xff]  ;;  %s318_s4 = smov 128  }
  0xa0   :  { %v84_v59 = vmul.f32 %v83_v54, %v75_v10 }
  0xa1   :  { %v96_v43 = vadd.f32 1.0, %v95_v39  ;;  %v132_v45 = vadd.f32 0.112945676, %v131_v41  ;;  %v121_v49 = vadd.f32 0.05243302, %v120_v44 }
  0xa2   :  { %v85_v1 = vadd.f32 1.1283791, %v84_v59 }
  0xa3   :  { %286 = vrcp.f32 %v96_v43  ;;  %v133_v47 = vmul.f32 %v132_v45, %v115_v22  ;;  %v122_v56 = vmul.f32 %v121_v49, %v115_v22  ;;  %v108_v61 = vand.u32 2147483648, %v96_v43 }
  0xa4   :  { %v106_v63 = vand.u32 2147483647, %v96_v43  ;;  %vm102_vm2 = vweird.f32 %v96_v43  ;;  %v86_v11 = vmul.f32 %v85_v1, %v369_v8 }
  0xa5   :  { %v134_v50 = vadd.f32 0.4994258, %v133_v47  ;;  %v123_v62 = vadd.f32 0.18741608, %v122_v56  ;;  %v109_v4 = vor.u32 1.1754944e-38, %v108_v61 }
  0xa6   :  { %vm107_vm4 = vcmp.eq.f32.partialorder %v106_v63, 8.507059e+37 }
  0xa7   :  { %v135_v51 = vmul.f32 %v134_v50, %v115_v22  ;;  %v124_v5 = vmul.f32 %v123_v62, %v115_v22 }
  0xa9   :  { %v287_v53 = vpop.eup %286  ;;  %v136_v57 = vadd.f32 1.0, %v135_v51  ;;  %v125_v10 = vadd.f32 1.1283791, %v124_v5 }
  0xaa   :  { %v98_v55 = vmul.f32 %v287_v53, %v96_v43  ;;  %vm103_vm1 = vweird.f32 %v287_v53 }
  0xab   :  { %288 = vrcp.f32 %v136_v57  ;;  %vm104_vm3 = vmor %vm102_vm2, %vm103_vm1  ;;  %v148_v13 = vand.u32 2147483648, %v136_v57  ;;  %v146_v18 = vand.u32 2147483647, %v136_v57  ;;  %vm142_vm6 = vweird.f32 %v136_v57 }
  0xac   :  { %v99_v58 = vsub.f32 1.0, %v98_v55  ;;  %v126_v23 = vmul.f32 %v125_v10, %v376_v17  ;;  %v160_v17 = vld [vmem:[#allocation2 + $0x8] sm:$0xff] }
  0xad   :  { %v149_v20 = vor.u32 1.1754944e-38, %v148_v13  ;;  %vm147_vm8 = vcmp.eq.f32.partialorder %v146_v18, 8.507059e+37 }
  0xae   :  { %v100_v60 = vmul.f32 %v287_v53, %v99_v58 }
  0xb0   :  { %v101_v0 = vadd.f32 %v287_v53, %v100_v60 }
  0xb1   :  { %v289_v2 = vpop.eup %288 }
  0xb2   :  { %v105_v3 = vsel %vm104_vm3, %v287_v53, %v101_v0  ;;  %v138_v6 = vmul.f32 %v289_v2, %v136_v57  ;;  %vm143_vm5 = vweird.f32 %v289_v2 }
  0xb3   :  { %v110_v9 = vsel %vm107_vm4, %v109_v4, %v105_v3  ;;  %vm144_vm7 = vmor %vm142_vm6, %vm143_vm5 }
  0xb4   :  { %v139_v12 = vsub.f32 1.0, %v138_v6  ;;  %v111_v15 = vmul.f32 %v110_v9, %v86_v11 }
  0xb6   :  { %v140_v16 = vmul.f32 %v289_v2, %v139_v12  ;;  %v255_v21 = vclamps-f32 %v111_v15, 1.0 }
  0xb8   :  { %v141_v19 = vadd.f32 %v289_v2, %v140_v16  ;;  %v154_v26 = vadd.f32 1.0, %v255_v21 }
  0xba   :  { %v145_v22 = vsel %vm144_vm7, %v289_v2, %v141_v19  ;;  %v156_v30 = vmul.f32 %v154_v26, %v70_v27 }
  0xbb   :  { %v150_v24 = vsel %vm147_vm8, %v149_v20, %v145_v22 }
  0xbc   :  { %v151_v25 = vmul.f32 %v150_v24, %v126_v23 }
  0xbe   :  { %v256_v8 = vclamps-f32 %v151_v25, 1.0 }
  0xc0   :  { %v155_v29 = vadd.f32 1.0, %v256_v8 }
  0xc2   :  { %v157_v31 = vmul.f32 %v155_v29, %v71_v28 }
  0xc4   :  { %v158_v32 = vpack.c.bf16 %v157_v31, %v156_v30 }
  0xc6   :  { %273 = vmatmul.msk.bf16.vlgmr.msra.gmra.mxu1 %vm193_vm9, %v158_v32 }
 0x143   :  { %v206_v34 = vpop.f32.mrf.mxu1 }
 0x144   :  { %v211_v35 = vadd.f32 %v206_v34, %v159_v33 }
 0x146   :  { %213 = vst.msk [vmem:[#allocation2] sm:$0xff] %vm26_vm0, %v211_v35 }
 0x14b   :  { %v208_v37 = vpop.f32.mrf.mxu1 }
 0x14c   :  { %v212_v7 = vadd.f32 %v208_v37, %v160_v17 }
 0x14d   :  { %v218_v38 = vld [vmem:[#allocation2] sm:$0xff] }
 0x14e   :  { %214 = vst.msk [vmem:[#allocation2 + $0x8] sm:$0xff] %vm26_vm0, %v212_v7  ;;  %v224_v14 = vadd.f32 %v285_v36, %v218_v38 }
 0x150   :  { %226 = vst.msk [vmem:[#allocation3] sm:$0xff] %vm26_vm0, %v224_v14 }
 0x155   :  { %v219_v39 = vld [vmem:[#allocation2 + $0x8] sm:$0xff] }
 0x156   :  { %v225_v40 = vadd.f32 %v285_v36, %v219_v39 }
 0x158   :  { %227 = vst.msk [vmem:[#allocation3 + $0x8] sm:$0xff] %vm26_vm0, %v225_v40 }
 0x159   :  { %240 = dma.vmem_to_hbm [thread:$0]  %s233_s10, 256, %s235_s13, [#allocation4], %s318_s4, %s318_s4, %s319_s14  }
 0x15a   :  { %314 = dma.done.wait [#allocation4], 256  }
 0x15b   :  { %315 = vsyncadd [#allocation4], 4294967040 }
 0x15c   :  { %245 = vsyncpa [#allocation4], 1 }

</bundles_post_ra>
